<compile_context>
chip_gen: v7x
topology: tpu7x:2x2x1
jax: 0.10.0
libtpu: 0.0.40
codegen_flags: <defaults>
</compile_context>

<pallas_src>
import functools

import jax
import jax.numpy as jnp
from jax.experimental import pallas as pl
from jax.experimental.pallas import tpu as pltpu

NUM_CLASSES = 10
BOTTLENECK_DIMS = 256
LANE = 128  # padded logits width (TPU lane width)


def _round_up(x, m):
    return (x + m - 1) // m * m


def _bottleneck_classifier_kernel(x_ref, w_bn_ref, w_cls_ref, b_ref, out_ref):
    """One batch tile: stand-in bottleneck projection + classifier head.

    x_ref     : (BM, F)       bf16  batch tile of the flattened input
    w_bn_ref  : (F, 256)      bf16  stand-in bottleneck weight (rows pre-permuted
                                    so x can stay in native (B, C*L) order)
    w_cls_ref : (256, 128)    f32   classifier weight, pre-transposed + lane-padded
    b_ref     : (1, 128)      f32   classifier bias, lane-padded
    out_ref   : (BM, 128)     f32   lane-dense padded logits
    """
    # MXU matmul #1: bf16 operands, f32 accumulation.
    bottleneck = jnp.dot(x_ref[...], w_bn_ref[...],
                         preferred_element_type=jnp.float32)
    # MXU matmul #2 (small) + bias in f32; 128-wide output -> no masked stores.
    logits = jnp.dot(bottleneck, w_cls_ref[...],
                     preferred_element_type=jnp.float32) + b_ref[...]
    out_ref[...] = logits.astype(out_ref.dtype)


def _reorder_bottleneck_weight(w_bn_lc, C, L):
    """Fold the NCL->NLC permutation into the bottleneck weight (one-time).

    PyTorch flattens the permuted input with row index (l*C + c).  We keep x in
    its native (B, C*L) layout (row index c*L + l) and instead permute the
    weight rows: w_out[c*L + l, :] = w_in[l*C + c, :].
    """
    D = w_bn_lc.shape[-1]
    w = w_bn_lc.reshape(L, C, D)
    w = jnp.transpose(w, (1, 0, 2))
    return w.reshape(C * L, D)


def prepare_params(w_bn_lc, w_linear, b_linear, C, L):
    """One-time parameter preprocessing: reorder, transpose, lane-pad, cast."""
    w_bn = _reorder_bottleneck_weight(w_bn_lc, C, L).astype(jnp.bfloat16)
    nc = w_linear.shape[0]
    w_cls = jnp.zeros((BOTTLENECK_DIMS, LANE), jnp.float32)
    w_cls = w_cls.at[:, :nc].set(jnp.transpose(w_linear).astype(jnp.float32))
    b_cls = jnp.zeros((1, LANE), jnp.float32)
    b_cls = b_cls.at[0, :nc].set(b_linear.astype(jnp.float32))
    return w_bn, w_cls, b_cls


@functools.partial(jax.jit, static_argnames=())
def linear_bottleneck_forward(x_ncl, w_bn, w_cls_pad, b_cls_pad):
    """x_ncl: (B, C, L) float32.  Returns logits (B, NUM_CLASSES) float32."""
    B, C, L = x_ncl.shape
    F = C * L

    # Free reshape (NCL already row-major over C, L); permutation lives in w_bn.
    x_flat = x_ncl.reshape(B, F).astype(jnp.bfloat16)

    # Batch tile: fill the MXU M axis when B allows; >=16 rows (bf16 sublanes).
    if B >= 256:
        bm = 256
    elif B >= 128:
        bm = 128
    else:
        bm = _round_up(max(B, 1), 16)
    b_pad = _round_up(B, bm)
    if b_pad != B:
        x_flat = jnp.pad(x_flat, ((0, b_pad - B), (0, 0)))
    n_blocks = b_pad // bm

    # VMEM budget: double-buffered x/out tiles + resident weights + f32 temps.
    vmem_bytes = (2 * bm * F * 2                      # x tiles (bf16, 2 bufs)
                  + F * BOTTLENECK_DIMS * 2           # w_bn (bf16, resident)
                  + BOTTLENECK_DIMS * LANE * 4        # w_cls (f32)
                  + LANE * 4                          # bias
                  + 2 * bm * LANE * 4                 # out tiles (f32, 2 bufs)
                  + bm * BOTTLENECK_DIMS * 4)         # bottleneck temp (f32)
    vmem_limit = min(max(2 * vmem_bytes, 32 * 1024 * 1024), 48 * 1024 * 1024)

    cost = pl.CostEstimate(
        flops=2 * b_pad * F * BOTTLENECK_DIMS + 2 * b_pad * BOTTLENECK_DIMS * LANE,
        transcendentals=0,
        bytes_accessed=(x_flat.size * 2 + w_bn.size * 2
                        + w_cls_pad.size * 4 + b_cls_pad.size * 4
                        + b_pad * LANE * 4),
    )

    out_pad = pl.pallas_call(
        _bottleneck_classifier_kernel,
        out_shape=jax.ShapeDtypeStruct((b_pad, LANE), jnp.float32),
        grid=(n_blocks,),
        in_specs=[
            pl.BlockSpec((bm, F), lambda i: (i, 0)),                   # x tile
            pl.BlockSpec((F, BOTTLENECK_DIMS), lambda i: (0, 0)),      # w_bn
            pl.BlockSpec((BOTTLENECK_DIMS, LANE), lambda i: (0, 0)),   # w_cls
            pl.BlockSpec((1, LANE), lambda i: (0, 0)),                 # bias
        ],
        out_specs=pl.BlockSpec((bm, LANE), lambda i: (i, 0)),
        compiler_params=pltpu.CompilerParams(
            dimension_semantics=("parallel",),
            vmem_limit_bytes=vmem_limit),
        cost_estimate=cost,
    )(x_flat, w_bn, w_cls_pad, b_cls_pad)

    return out_pad[:B, :NUM_CLASSES]


if __name__ == "__main__":
    key = jax.random.PRNGKey(0)
    k_x, k_bn, k_w, k_b = jax.random.split(key, 4)

    # Small shapes consistent with the forward: x is (B, C, L).
    B, C, L = 2, 4, 16
    F = L * C

    x = jax.random.normal(k_x, (B, C, L), dtype=jnp.float32)

    # Stand-in bottleneck projection, indexed like the permuted-flattened input
    # (row index l*C + c), exactly as the previous version.
    w_bn_lc = jax.random.normal(k_bn, (F, BOTTLENECK_DIMS), dtype=jnp.float32) * 0.02

    # Classifier head: torch.nn.Linear(256, num_classes).
    w_linear = jax.random.normal(k_w, (NUM_CLASSES, BOTTLENECK_DIMS),
                                 dtype=jnp.float32) * 0.02
    b_linear = jax.random.normal(k_b, (NUM_CLASSES,), dtype=jnp.float32) * 0.02

    w_bn, w_cls_pad, b_cls_pad = prepare_params(w_bn_lc, w_linear, b_linear, C, L)

    logits = linear_bottleneck_forward(x, w_bn, w_cls_pad, b_cls_pad)
    logits = jax.block_until_ready(logits)

    # Pure-JAX f32 reference (original formulation: permute -> flatten -> 2 GEMMs).
    x_perm_flat = jnp.transpose(x, (0, 2, 1)).reshape(B, F)
    ref = (x_perm_flat @ w_bn_lc) @ jnp.transpose(w_linear) + b_linear

    assert logits.shape == (B, NUM_CLASSES)
    assert logits.dtype == jnp.float32
    assert bool(jnp.all(jnp.isfinite(logits)))
    assert bool(jnp.allclose(logits, ref, rtol=3e-2, atol=3e-3)), (
        f"max abs err {float(jnp.max(jnp.abs(logits - ref)))}")
    print("KERNEL_OK")
</pallas_src>

<mosaic_0001>
module attributes {stable_mosaic.version = 11 : i64} {
  func.func @_bottleneck_classifier_kernel(%arg0: i32, %arg1: memref<16x64xbf16, #tpu.memory_space<vmem>>, %arg2: memref<64x256xbf16, #tpu.memory_space<vmem>>, %arg3: memref<256x128xf32, #tpu.memory_space<vmem>>, %arg4: memref<1x128xf32, #tpu.memory_space<vmem>>, %arg5: memref<16x128xf32, #tpu.memory_space<vmem>>) attributes {dimension_semantics = [#tpu.dimension_semantics<parallel>], iteration_bounds = array<i64: 1>, scalar_prefetch = 0 : i64, scratch_operands = 0 : i64, tpu.core_type = #tpu.core_type<tc>, window_params = [{transform_indices = @transform_0, window_bounds = array<i64: 16, 64>}, {pipeline_mode = #tpu.pipeline_mode<synchronous>, transform_indices = @transform_1, window_bounds = array<i64: 64, 256>}, {pipeline_mode = #tpu.pipeline_mode<synchronous>, transform_indices = @transform_2, window_bounds = array<i64: 256, 128>}, {pipeline_mode = #tpu.pipeline_mode<synchronous>, transform_indices = @transform_3, window_bounds = array<i64: 1, 128>}, {transform_indices = @transform_4, window_bounds = array<i64: 16, 128>}]} {
    %c0 = arith.constant 0 : index
    %c0_0 = arith.constant 0 : index
    %0 = vector.load %arg1[%c0, %c0_0] : memref<16x64xbf16, #tpu.memory_space<vmem>>, vector<16x64xbf16>
    %c0_1 = arith.constant 0 : index
    %c0_2 = arith.constant 0 : index
    %1 = vector.load %arg2[%c0_1, %c0_2] : memref<64x256xbf16, #tpu.memory_space<vmem>>, vector<64x256xbf16>
    %cst = arith.constant dense<0.000000e+00> : vector<16x256xf32>
    %2 = tpu.matmul %0, %1, %cst {dimension_numbers = #tpu.dot_dimension_numbers<[1], [0], [0], [1], [0, 0, 1, 1], [], []>} : vector<16x64xbf16>, vector<64x256xbf16>, vector<16x256xf32> -> vector<16x256xf32>
    %c0_3 = arith.constant 0 : index
    %c0_4 = arith.constant 0 : index
    %3 = vector.load %arg3[%c0_3, %c0_4] : memref<256x128xf32, #tpu.memory_space<vmem>>, vector<256x128xf32>
    %cst_5 = arith.constant dense<0.000000e+00> : vector<16x128xf32>
    %4 = tpu.matmul %2, %3, %cst_5 {dimension_numbers = #tpu.dot_dimension_numbers<[1], [0], [0], [1], [0, 0, 1, 1], [], []>} : vector<16x256xf32>, vector<256x128xf32>, vector<16x128xf32> -> vector<16x128xf32>
    %c0_6 = arith.constant 0 : index
    %c0_7 = arith.constant 0 : index
    %5 = vector.load %arg4[%c0_6, %c0_7] : memref<1x128xf32, #tpu.memory_space<vmem>>, vector<1x128xf32>
    %6 = vector.broadcast %5 : vector<1x128xf32> to vector<16x128xf32>
    %7 = arith.addf %4, %6 : vector<16x128xf32>
    %c0_8 = arith.constant 0 : index
    %c0_9 = arith.constant 0 : index
    %8 = vector.load %arg5[%c0_8, %c0_9] : memref<16x128xf32, #tpu.memory_space<vmem>>, vector<16x128xf32>
    tpu.vector_store %arg5[%c0_8, %c0_9], %7 {strides = array<i32>} : memref<16x128xf32, #tpu.memory_space<vmem>>, vector<16x128xf32>,
    return
  }
  func.func @transform_0(%arg0: i32) -> (i32, i32) {
    %c0_i32 = arith.constant 0 : i32
    %c0_i32_0 = arith.constant 0 : i32
    return %arg0, %c0_i32 : i32, i32
  }
  func.func @transform_1(%arg0: i32) -> (i32, i32) {
    %c0_i32 = arith.constant 0 : i32
    %c0_i32_0 = arith.constant 0 : i32
    %c0_i32_1 = arith.constant 0 : i32
    return %c0_i32, %c0_i32_0 : i32, i32
  }
  func.func @transform_2(%arg0: i32) -> (i32, i32) {
    %c0_i32 = arith.constant 0 : i32
    %c0_i32_0 = arith.constant 0 : i32
    %c0_i32_1 = arith.constant 0 : i32
    return %c0_i32, %c0_i32_0 : i32, i32
  }
  func.func @transform_3(%arg0: i32) -> (i32, i32) {
    %c0_i32 = arith.constant 0 : i32
    %c0_i32_0 = arith.constant 0 : i32
    %c0_i32_1 = arith.constant 0 : i32
    return %c0_i32, %c0_i32_0 : i32, i32
  }
  func.func @transform_4(%arg0: i32) -> (i32, i32) {
    %c0_i32 = arith.constant 0 : i32
    %c0_i32_0 = arith.constant 0 : i32
    return %arg0, %c0_i32 : i32, i32
  }
}

</mosaic_0001>

<bundles_post_ra>
// kernel: linear_bottleneck_forward.1
= control target key start
LH: loop header
LB: loop body
LE: loop exit
PB: predicated region body
PF: predicated region fallthrough
CT: control target
= control target key end

     0   :  { %9 = vsyncpa [#allocation3], 0  ;;  %s483_s0 = inlined_call_operand.vmem [shape: bf16[16,64], index: 0, kind: input, shape index: {}]   ;;  %s484_s1 = inlined_call_operand.hbm [shape: bf16[64,256], index: 1, kind: input, shape index: {}]   ;;  %s485_s2 = inlined_call_operand.hbm [shape: f32[256,128], index: 2, kind: input, shape index: {}]   ;;  %s486_s3 = inlined_call_operand.vmem [shape: f32[1,128], index: 3, kind: input, shape index: {}]   ;;  %s487_s4 = inlined_call_operand.vmem [shape: f32[16,128], index: 4, kind: output, shape index: {}]  }
   0x1   :  { %10 = vsyncpa [#allocation5], 0  ;;  %s417_s15 = smov [#allocation2]   ;;  %s369_s19 = scalar_lea.hbm %s484_s1, 1024 }
   0x2   :  { %s18_s16 = sshll.u32 %s417_s15, 4  ;;  %p370_p0 = scmp.ne.s32.totalorder %s484_s1, %s369_s19  ;;  %s19_s16 = int_to_ptr.vmem [resolvable:$true] %s18_s16 }
   0x3   :  { %p373_p1 = scmp.lt.u32.totalorder %s369_s19, %s484_s1 }
   0x5   :  { %p375_p2 = pnand %p373_p1, %p370_p0 }
   0x7   :  { %378 = shalt.err (!%p375_p2)
}
   0x8   :  { %s379_s24 = scalar_lea.vmem %s19_s16, 1024  ;;  %p384_p4 = scmp.lt.s32.totalorder %s19_s16, %s19_s16 }
   0x9   :  { %p380_p3 = scmp.ne.s32.totalorder %s19_s16, %s379_s24  ;;  %p385_p5 = scmp.lt.s32.totalorder %s379_s24, %s379_s24 }
   0xb   :  { %p386_p6 = por %p385_p5, %p384_p4 }
   0xd   :  { %p387_p7 = pnand %p386_p6, %p380_p3 }
   0xf   :  { %390 = shalt.err (!%p387_p7)
}
  0x10   :  { %s418_s25 = smov 128   ;;  %s419_s26 = smov 8  }
  0x11   :  { %24 = dma.hbm_to_vmem [thread:$0]  %s484_s1, 1024, %s19_s16, [#allocation3], %s418_s25, %s418_s25, %s419_s26  }
  0x12   :  { %s420_s29 = smov [#allocation4]   ;;  %s391_s7 = scalar_lea.hbm %s485_s2, 4096 }
  0x13   :  { %s30_s30 = sshll.u32 %s420_s29, 4  ;;  %p392_p8 = scmp.ne.s32.totalorder %s485_s2, %s391_s7  ;;  %s31_s30 = int_to_ptr.vmem [resolvable:$true] %s30_s30 }
  0x14   :  { %p395_p9 = scmp.lt.u32.totalorder %s391_s7, %s485_s2 }
  0x16   :  { %p397_p10 = pnand %p395_p9, %p392_p8 }
  0x18   :  { %400 = shalt.err (!%p397_p10)
}
  0x19   :  { %s401_s12 = scalar_lea.vmem %s31_s30, 4096  ;;  %p406_p12 = scmp.lt.s32.totalorder %s31_s30, %s31_s30 }
  0x1a   :  { %p402_p11 = scmp.ne.s32.totalorder %s31_s30, %s401_s12  ;;  %p407_p13 = scmp.lt.s32.totalorder %s401_s12, %s401_s12 }
  0x1c   :  { %p408_p0 = por %p407_p13, %p406_p12 }
  0x1e   :  { %p409_p1 = pnand %p408_p0, %p402_p11 }
  0x20   :  { %412 = shalt.err (!%p409_p1)
}
  0x21   :  { %36 = dma.hbm_to_vmem [thread:$0]  %s485_s2, 4096, %s31_s30, [#allocation5], %s418_s25, %s418_s25, %s419_s26  }
  0x22   :  { %413 = dma.done.wait [#allocation3], 1024  }
  0x23   :  { %414 = vsyncadd [#allocation3], 4294966272 }
  0x24   :  { %415 = dma.done.wait [#allocation5], 4096  }
  0x25   :  { %416 = vsyncadd [#allocation5], 4294963200  ;;  %v421_v0 = vmov 0   ;;  %v356_v1 = vld [vmem:[#allocation2 + $0x4] ss:$8 sps:$4 sm:$0xff]   ;;  %v166_v13 = vld [vmem:[#allocation4 + $0x90] sm:$0xff] }
  0x26   :  { %137 = vmatprep.mubr.bf16.mxu0 %v421_v0  ;;  %v358_v2 = vld [vmem:[#allocation2] ss:$8 sps:$4 sm:$0xff]   ;;  %105 = vmatprep.subr.bf16.mxu0 %v356_v1  ;;  %v359_v3 = vld [vmem:[#allocation2 + $0x14] ss:$8 sps:$4 sm:$0xff]   ;;  %v361_v4 = vld [vmem:[#allocation2 + $0x10] ss:$8 sps:$4 sm:$0xff]  }
  0x27   :  { %106 = vmatpush1.bf16.msra.mxu0 %v358_v2  ;;  %v362_v5 = vld [vmem:[#allocation2 + $0x24] ss:$8 sps:$4 sm:$0xff]   ;;  %v364_v6 = vld [vmem:[#allocation2 + $0x20] ss:$8 sps:$4 sm:$0xff]   ;;  %v365_v7 = vld [vmem:[#allocation2 + $0x34] ss:$8 sps:$4 sm:$0xff]  }
  0x28   :  { %107 = vmatprep.subr.bf16.mxu0 %v359_v3  ;;  %v164_v8 = vld [vmem:[#allocation4 + $0x80] sm:$0xff]  ;;  %v165_v9 = vld [vmem:[#allocation4 + $0x88] sm:$0xff]  ;;  %v167_v15 = vld [vmem:[#allocation4 + $0x98] sm:$0xff]  ;;  %vm101_vm0 = vcmask 523264  }
  0x29   :  { %v319_v10 = vpack.c.bf16 %v165_v9, %v164_v8  ;;  %v148_v11 = vld [vmem:[#allocation4] sm:$0xff]  ;;  %v149_v12 = vld [vmem:[#allocation4 + $0x8] sm:$0xff]  ;;  %v150_v16 = vld [vmem:[#allocation4 + $0x10] sm:$0xff]  ;;  %v323_v18 = vpack.c.bf16 %v167_v15, %v166_v13 }
  0x2a   :  { %v321_v14 = vpack.c.bf16 %v149_v12, %v148_v11  ;;  %v151_v17 = vld [vmem:[#allocation4 + $0x18] sm:$0xff]  ;;  %v168_v19 = vld [vmem:[#allocation4 + $0xa0] sm:$0xff]  ;;  %v169_v20 = vld [vmem:[#allocation4 + $0xa8] sm:$0xff] }
  0x2b   :  { %108 = vmatpush1.bf16.msra.mxu0 %v361_v4  ;;  %320 = vmatprep.subr.bf16.mxu1 %v319_v10  ;;  %v325_v21 = vpack.c.bf16 %v151_v17, %v150_v16  ;;  %v367_v22 = vld [vmem:[#allocation2 + $0x30] ss:$8 sps:$4 sm:$0xff]   ;;  %v327_v23 = vpack.c.bf16 %v169_v20, %v168_v19  ;;  %v152_v24 = vld [vmem:[#allocation4 + $0x20] sm:$0xff]  ;;  %v153_v25 = vld [vmem:[#allocation4 + $0x28] sm:$0xff] }
  0x2c   :  { %109 = vmatprep.subr.bf16.mxu0 %v362_v5  ;;  %322 = vmatpush3.bf16.msra.mxu1 %v321_v14  ;;  %v170_v26 = vld [vmem:[#allocation4 + $0xb0] sm:$0xff]  ;;  %v171_v27 = vld [vmem:[#allocation4 + $0xb8] sm:$0xff]  ;;  %v368_v28 = vld [vmem:[%s483_s0] sm:$0xff]   ;;  %v329_v29 = vpack.c.bf16 %v153_v25, %v152_v24 }
  0x2d   :  { %324 = vmatprep.subr.bf16.mxu1 %v323_v18  ;;  %v331_v30 = vpack.c.bf16 %v171_v27, %v170_v26  ;;  %v154_v31 = vld [vmem:[#allocation4 + $0x30] sm:$0xff]  ;;  %v155_v32 = vld [vmem:[#allocation4 + $0x38] sm:$0xff]  ;;  %v172_v33 = vld [vmem:[#allocation4 + $0xc0] sm:$0xff] }
  0x2e   :  { %v173_v34 = vld [vmem:[#allocation4 + $0xc8] sm:$0xff]  ;;  %v333_v35 = vpack.c.bf16 %v155_v32, %v154_v31  ;;  %v156_v37 = vld [vmem:[#allocation4 + $0x40] sm:$0xff]  ;;  %v174_v39 = vld [vmem:[#allocation4 + $0xd0] sm:$0xff] }
  0x2f   :  { %110 = vmatpush1.bf16.msra.mxu0 %v364_v6  ;;  %v335_v36 = vpack.c.bf16 %v173_v34, %v172_v33  ;;  %v157_v38 = vld [vmem:[#allocation4 + $0x48] sm:$0xff]  ;;  %v175_v40 = vld [vmem:[#allocation4 + $0xd8] sm:$0xff]  ;;  %v158_v43 = vld [vmem:[#allocation4 + $0x50] sm:$0xff] }
  0x30   :  { %111 = vmatprep.subr.bf16.mxu0 %v365_v7  ;;  %326 = vmatpush3.bf16.msra.mxu1 %v325_v21  ;;  %v337_v41 = vpack.c.bf16 %v157_v38, %v156_v37  ;;  %v339_v42 = vpack.c.bf16 %v175_v40, %v174_v39  ;;  %v159_v44 = vld [vmem:[#allocation4 + $0x58] sm:$0xff]  ;;  %v176_v45 = vld [vmem:[#allocation4 + $0xe0] sm:$0xff]  ;;  %v177_v46 = vld [vmem:[#allocation4 + $0xe8] sm:$0xff] }
  0x31   :  { %328 = vmatprep.subr.bf16.mxu1 %v327_v23  ;;  %v341_v47 = vpack.c.bf16 %v159_v44, %v158_v43  ;;  %v343_v48 = vpack.c.bf16 %v177_v46, %v176_v45  ;;  %v160_v49 = vld [vmem:[#allocation4 + $0x60] sm:$0xff]  ;;  %v161_v50 = vld [vmem:[#allocation4 + $0x68] sm:$0xff]  ;;  %v178_v51 = vld [vmem:[#allocation4 + $0xf0] sm:$0xff] }
  0x32   :  { %v179_v52 = vld [vmem:[#allocation4 + $0xf8] sm:$0xff]  ;;  %v345_v53 = vpack.c.bf16 %v161_v50, %v160_v49  ;;  %v162_v55 = vld [vmem:[#allocation4 + $0x70] sm:$0xff]  ;;  %v280_v63 = vld [vmem:[%s486_s3] ss:$0 sm:$0xff] }
  0x33   :  { %112 = vmatpush1.bf16.msra.mxu0 %v367_v22  ;;  %v347_v54 = vpack.c.bf16 %v179_v52, %v178_v51  ;;  %v163_v56 = vld [vmem:[#allocation4 + $0x78] sm:$0xff] }
  0x34   :  { %330 = vmatpush3.bf16.msra.mxu1 %v329_v29  ;;  %v349_v57 = vpack.c.bf16 %v163_v56, %v162_v55 }
  0x35   :  { %332 = vmatprep.subr.bf16.mxu1 %v331_v30 }
  0x36   :  { %279 = vmatmul.mubr.msk.bf16.vlgmr.msra.gmra.mrb[0].mxu0 %vm101_vm0, %v368_v28 }
  0x38   :  { %334 = vmatpush3.bf16.msra.mxu1 %v333_v35 }
  0x39   :  { %336 = vmatprep.subr.bf16.mxu1 %v335_v36 }
  0x3c   :  { %338 = vmatpush3.bf16.msra.mxu1 %v337_v41 }
  0x3d   :  { %340 = vmatprep.subr.bf16.mxu1 %v339_v42 }
  0x40   :  { %342 = vmatpush3.bf16.msra.mxu1 %v341_v47 }
  0x41   :  { %344 = vmatprep.subr.bf16.mxu1 %v343_v48 }
  0x44   :  { %346 = vmatpush3.bf16.msra.mxu1 %v345_v53 }
  0x45   :  { %348 = vmatprep.subr.bf16.mxu1 %v347_v54 }
  0x48   :  { %350 = vmatpush3.bf16.msra.mxu1 %v349_v57 }
 0x109   :  { %v139_v58 = vpop.f32.mrb[0].mxu0 }
 0x10a   :  { %v141_v59 = vpop.f32.mrb[1].mxu0 }
 0x10b   :  { %v143_v60 = vpop.f32.mrb[2].mxu0  ;;  %251 = vmatprep.mubr.f32.mxu1 %v141_v59 }
 0x10c   :  { %v145_v61 = vpop.f32.mrb[3].mxu0  ;;  %252 = vmatmul.mubr.f32.vlgmr.msra.gmra.mrb[0].mxu1 %v139_v58 }
 0x10d   :  { %256 = vmatprep.mubr.f32.mxu1 %v145_v61 }
 0x110   :  { %257 = vmatmul.mubr.f32.gmra.mrb[2].mxu1 %v143_v60 }
 0x1df   :  { %v313_v62 = vpop.f32.mrb[0].mxu1 }
 0x1e0   :  { %v314_v0 = vpop.f32.mrb[1].mxu1 }
 0x1e1   :  { %v315_v1 = vadd.f32 %v314_v0, %v313_v62 }
 0x1e3   :  { %v254_v2 = vadd.f32 %v315_v1, %v280_v63  ;;  %v316_v3 = vpop.f32.mrb[2].mxu1 }
 0x1e4   :  { %v317_v4 = vpop.f32.mrb[3].mxu1 }
 0x1e5   :  { %262 = vst [vmem:[%s487_s4] sm:$0xff] %v254_v2  ;;  %v318_v5 = vadd.f32 %v317_v4, %v316_v3 }
 0x1e7   :  { %v259_v6 = vadd.f32 %v318_v5, %v280_v63 }
 0x1e9   :  { %263 = vst [vmem:[%s487_s4 + $0x8] sm:$0xff] %v259_v6 }
 0x1ea   :  { %268 = vsyncpa [#allocation3], 1 }
 0x1eb   :  { %269 = vsyncpa [#allocation5], 1 }

</bundles_post_ra>
